<compile_context>
chip_gen: v7x
topology: tpu7x:2x2x1
jax: 0.10.0
libtpu: 0.0.40
codegen_flags: <defaults>
</compile_context>

<pallas_src>
import jax
import jax.numpy as jnp
from jax.experimental import pallas as pl
from jax.experimental.pallas import tpu as pltpu

# Small, tile-friendly sizes (lane dim = 128, sublane multiple of 8).
BATCH = 8
SEQ = 6
VOCAB = 128
HIDDEN = 128


def rnn_fused_kernel(tok_ref, h0_ref, w_ih_ref, b_rnn_ref, w_cat_ref, b_d_ref,
                     out_ref, hT_ref):
    """Full RNNModel forward in one invocation.

    tok_ref   : (SEQ*BATCH,)           i32  SMEM  time-major token ids
    h0_ref    : (BATCH, HIDDEN)        f32  VMEM  initial hidden state
    w_ih_ref  : (VOCAB, HIDDEN)        f32  VMEM  W_ih^T (one-hot matmul == row gather)
    b_rnn_ref : (1, HIDDEN)            f32  VMEM  b_ih + b_hh
    w_cat_ref : (HIDDEN, HIDDEN+VOCAB) f32  VMEM  [W_hh^T | W_dense^T]
    b_d_ref   : (1, VOCAB)             f32  VMEM  dense bias
    out_ref   : (SEQ*BATCH, VOCAB)     f32        dense(Y.view(-1, H))
    hT_ref    : (BATCH, HIDDEN)        f32        final hidden state
    """
    w_cat = w_cat_ref[...]   # resident for the whole (statically unrolled) recurrence
    b_rnn = b_rnn_ref[...]
    b_d = b_d_ref[...]

    h = h0_ref[...]          # carried in vregs; no VMEM round trip for the recurrence
    for t in range(SEQ):     # SEQ is tiny & static -> full unroll, static row offsets
        # x_t = one_hot(token_t) @ W_ih^T  ==  gather of 8 rows of W_ih^T (+ fused bias).
        rows = [w_ih_ref[pl.ds(tok_ref[t * BATCH + b], 1), :] for b in range(BATCH)]
        x_t = jnp.concatenate(rows, axis=0) + b_rnn                   # (BATCH, HIDDEN)

        # One MXU pass against the concatenated RHS [W_hh^T | W_dense^T].
        z = jnp.dot(h, w_cat, preferred_element_type=jnp.float32)     # (BATCH, HIDDEN+VOCAB)

        if t > 0:
            # dense(h_{t-1}) came for free in the same MXU pass; store rows for time t-1.
            out_ref[pl.ds((t - 1) * BATCH, BATCH), :] = z[:, HIDDEN:] + b_d

        h = jnp.tanh(x_t + z[:, :HIDDEN])                             # h_t

    hT_ref[...] = h
    # dense(h_{SEQ-1}) needs one final (8,128)@(128,128) matmul.
    out_ref[pl.ds((SEQ - 1) * BATCH, BATCH), :] = (
        jnp.dot(h, w_cat[:, HIDDEN:], preferred_element_type=jnp.float32) + b_d
    )


def prepare_params(w_ih, w_hh, b_ih, b_hh, w_dense, b_dense):
    """One-time (parameter-init) prep: transposes, fused RNN bias, concatenated RHS."""
    w_ih_t = jnp.transpose(w_ih)                                      # (VOCAB, HIDDEN)
    w_cat = jnp.concatenate(
        [jnp.transpose(w_hh), jnp.transpose(w_dense)], axis=1)        # (HIDDEN, HIDDEN+VOCAB)
    b_rnn = (b_ih + b_hh).reshape(1, HIDDEN)                          # (1, HIDDEN)
    b_d = b_dense.reshape(1, VOCAB)                                   # (1, VOCAB)
    return w_ih_t, w_cat, b_rnn, b_d


@jax.jit
def rnn_model_forward(inputs, h0, w_ih_t, w_cat, b_rnn, b_d):
    """inputs: (BATCH, SEQ) int32;  h0: (1, BATCH, HIDDEN) f32.

    Returns (output, state) matching the PyTorch module:
      output: (SEQ*BATCH, VOCAB) f32
      state : (1, BATCH, HIDDEN) f32
    """
    tokens = jnp.transpose(inputs, (1, 0)).reshape(-1).astype(jnp.int32)  # time-major

    out, hT = pl.pallas_call(
        rnn_fused_kernel,
        out_shape=(
            jax.ShapeDtypeStruct((SEQ * BATCH, VOCAB), jnp.float32),
            jax.ShapeDtypeStruct((BATCH, HIDDEN), jnp.float32),
        ),
        # No grid: single invocation, single-buffered operands (no pipeline bookkeeping).
        in_specs=[
            pl.BlockSpec(memory_space=pltpu.MemorySpace.SMEM),   # tokens (scalars)
            pl.BlockSpec(memory_space=pltpu.MemorySpace.VMEM),   # h0
            pl.BlockSpec(memory_space=pltpu.MemorySpace.VMEM),   # W_ih^T
            pl.BlockSpec(memory_space=pltpu.MemorySpace.VMEM),   # b_ih + b_hh
            pl.BlockSpec(memory_space=pltpu.MemorySpace.VMEM),   # [W_hh^T | W_dense^T]
            pl.BlockSpec(memory_space=pltpu.MemorySpace.VMEM),   # dense bias
        ],
        out_specs=(
            pl.BlockSpec(memory_space=pltpu.MemorySpace.VMEM),   # output
            pl.BlockSpec(memory_space=pltpu.MemorySpace.VMEM),   # final state
        ),
    )(tokens, h0[0], w_ih_t, b_rnn, w_cat, b_d)

    return out, hT[None]  # state: (1, BATCH, HIDDEN)


def rnn_model_reference(inputs, h0, w_ih, w_hh, b_ih, b_hh, w_dense, b_dense):
    """Pure-JAX reference mirroring the PyTorch module."""
    x_oh = jax.nn.one_hot(inputs.T, VOCAB, dtype=jnp.float32)  # (SEQ, BATCH, VOCAB)

    def step(h, x_t):
        h_new = jnp.tanh(x_t @ w_ih.T + b_ih + h @ w_hh.T + b_hh)
        return h_new, h_new

    hT, ys = jax.lax.scan(step, h0[0], x_oh)          # ys: (SEQ, BATCH, HIDDEN)
    out = ys.reshape(-1, HIDDEN) @ w_dense.T + b_dense
    return out, hT[None]


if __name__ == "__main__":
    key = jax.random.PRNGKey(0)
    k_idx, k_h0, k1, k2, k3, k4, k5, k6 = jax.random.split(key, 8)

    # Deterministic synthetic parameters (PyTorch-style uniform(-1/sqrt(H), 1/sqrt(H))).
    s = 1.0 / (HIDDEN ** 0.5)
    inputs = jax.random.randint(k_idx, (BATCH, SEQ), 0, VOCAB, dtype=jnp.int32)
    h0 = jax.random.normal(k_h0, (1, BATCH, HIDDEN), dtype=jnp.float32) * 0.1
    w_ih = jax.random.uniform(k1, (HIDDEN, VOCAB), jnp.float32, -s, s)
    w_hh = jax.random.uniform(k2, (HIDDEN, HIDDEN), jnp.float32, -s, s)
    b_ih = jax.random.uniform(k3, (HIDDEN,), jnp.float32, -s, s)
    b_hh = jax.random.uniform(k4, (HIDDEN,), jnp.float32, -s, s)
    w_dense = jax.random.uniform(k5, (VOCAB, HIDDEN), jnp.float32, -s, s)
    b_dense = jax.random.uniform(k6, (VOCAB,), jnp.float32, -s, s)

    # Init-time weight prep (not on the per-call path).
    w_ih_t, w_cat, b_rnn, b_d = prepare_params(w_ih, w_hh, b_ih, b_hh, w_dense, b_dense)

    out, state = rnn_model_forward(inputs, h0, w_ih_t, w_cat, b_rnn, b_d)
    out = jax.block_until_ready(out)
    state = jax.block_until_ready(state)

    ref_out, ref_state = rnn_model_reference(
        inputs, h0, w_ih, w_hh, b_ih, b_hh, w_dense, b_dense)
    assert out.shape == (SEQ * BATCH, VOCAB) and state.shape == (1, BATCH, HIDDEN)
    assert jnp.allclose(out, ref_out, atol=1e-4, rtol=1e-4)
    assert jnp.allclose(state, ref_state, atol=1e-4, rtol=1e-4)

    print("KERNEL_OK")
</pallas_src>

<mosaic_0001>
module attributes {stable_mosaic.version = 11 : i64} {
  func.func @rnn_fused_kernel(%arg0: memref<48xi32, #tpu.memory_space<smem>>, %arg1: memref<8x128xf32, #tpu.memory_space<vmem>>, %arg2: memref<128x128xf32, #tpu.memory_space<vmem>>, %arg3: memref<1x128xf32, #tpu.memory_space<vmem>>, %arg4: memref<128x256xf32, #tpu.memory_space<vmem>>, %arg5: memref<1x128xf32, #tpu.memory_space<vmem>>, %arg6: memref<48x128xf32, #tpu.memory_space<vmem>>, %arg7: memref<8x128xf32, #tpu.memory_space<vmem>>) attributes {dimension_semantics = [], scalar_prefetch = 0 : i64, scratch_operands = 0 : i64, tpu.core_type = #tpu.core_type<tc>} {
    %c0 = arith.constant 0 : index
    %c0_0 = arith.constant 0 : index
    %0 = vector.load %arg4[%c0, %c0_0] : memref<128x256xf32, #tpu.memory_space<vmem>>, vector<128x256xf32>
    %c0_1 = arith.constant 0 : index
    %c0_2 = arith.constant 0 : index
    %1 = vector.load %arg3[%c0_1, %c0_2] : memref<1x128xf32, #tpu.memory_space<vmem>>, vector<1x128xf32>
    %c0_3 = arith.constant 0 : index
    %c0_4 = arith.constant 0 : index
    %2 = vector.load %arg5[%c0_3, %c0_4] : memref<1x128xf32, #tpu.memory_space<vmem>>, vector<1x128xf32>
    %c0_5 = arith.constant 0 : index
    %c0_6 = arith.constant 0 : index
    %3 = vector.load %arg1[%c0_5, %c0_6] : memref<8x128xf32, #tpu.memory_space<vmem>>, vector<8x128xf32>
    %c0_7 = arith.constant 0 : index
    %4 = memref.load %arg0[%c0_7] : memref<48xi32, #tpu.memory_space<smem>>
    %5 = arith.index_cast %4 : i32 to index
    %c0_8 = arith.constant 0 : index
    %6 = vector.load %arg2[%5, %c0_8] : memref<128x128xf32, #tpu.memory_space<vmem>>, vector<1x128xf32>
    %c1 = arith.constant 1 : index
    %7 = memref.load %arg0[%c1] : memref<48xi32, #tpu.memory_space<smem>>
    %8 = arith.index_cast %7 : i32 to index
    %c0_9 = arith.constant 0 : index
    %9 = vector.load %arg2[%8, %c0_9] : memref<128x128xf32, #tpu.memory_space<vmem>>, vector<1x128xf32>
    %c2 = arith.constant 2 : index
    %10 = memref.load %arg0[%c2] : memref<48xi32, #tpu.memory_space<smem>>
    %11 = arith.index_cast %10 : i32 to index
    %c0_10 = arith.constant 0 : index
    %12 = vector.load %arg2[%11, %c0_10] : memref<128x128xf32, #tpu.memory_space<vmem>>, vector<1x128xf32>
    %c3 = arith.constant 3 : index
    %13 = memref.load %arg0[%c3] : memref<48xi32, #tpu.memory_space<smem>>
    %14 = arith.index_cast %13 : i32 to index
    %c0_11 = arith.constant 0 : index
    %15 = vector.load %arg2[%14, %c0_11] : memref<128x128xf32, #tpu.memory_space<vmem>>, vector<1x128xf32>
    %c4 = arith.constant 4 : index
    %16 = memref.load %arg0[%c4] : memref<48xi32, #tpu.memory_space<smem>>
    %17 = arith.index_cast %16 : i32 to index
    %c0_12 = arith.constant 0 : index
    %18 = vector.load %arg2[%17, %c0_12] : memref<128x128xf32, #tpu.memory_space<vmem>>, vector<1x128xf32>
    %c5 = arith.constant 5 : index
    %19 = memref.load %arg0[%c5] : memref<48xi32, #tpu.memory_space<smem>>
    %20 = arith.index_cast %19 : i32 to index
    %c0_13 = arith.constant 0 : index
    %21 = vector.load %arg2[%20, %c0_13] : memref<128x128xf32, #tpu.memory_space<vmem>>, vector<1x128xf32>
    %c6 = arith.constant 6 : index
    %22 = memref.load %arg0[%c6] : memref<48xi32, #tpu.memory_space<smem>>
    %23 = arith.index_cast %22 : i32 to index
    %c0_14 = arith.constant 0 : index
    %24 = vector.load %arg2[%23, %c0_14] : memref<128x128xf32, #tpu.memory_space<vmem>>, vector<1x128xf32>
    %c7 = arith.constant 7 : index
    %25 = memref.load %arg0[%c7] : memref<48xi32, #tpu.memory_space<smem>>
    %26 = arith.index_cast %25 : i32 to index
    %c0_15 = arith.constant 0 : index
    %27 = vector.load %arg2[%26, %c0_15] : memref<128x128xf32, #tpu.memory_space<vmem>>, vector<1x128xf32>
    %28 = tpu.concatenate %6, %9, %12, %15, %18, %21, %24, %27 in 0 : vector<1x128xf32>, vector<1x128xf32>, vector<1x128xf32>, vector<1x128xf32>, vector<1x128xf32>, vector<1x128xf32>, vector<1x128xf32>, vector<1x128xf32> -> vector<8x128xf32>
    %29 = vector.broadcast %1 : vector<1x128xf32> to vector<8x128xf32>
    %30 = arith.addf %28, %29 : vector<8x128xf32>
    %cst = arith.constant dense<0.000000e+00> : vector<8x256xf32>
    %31 = tpu.matmul %3, %0, %cst {dimension_numbers = #tpu.dot_dimension_numbers<[1], [0], [0], [1], [0, 0, 1, 1], [], []>} : vector<8x128xf32>, vector<128x256xf32>, vector<8x256xf32> -> vector<8x256xf32>
    %32 = vector.extract_strided_slice %31 {offsets = [0, 0], sizes = [8, 128], strides = [1, 1]} : vector<8x256xf32> to vector<8x128xf32>
    %33 = arith.addf %30, %32 : vector<8x128xf32>
    %34 = math.tanh %33 : vector<8x128xf32>
    %c8 = arith.constant 8 : index
    %35 = memref.load %arg0[%c8] : memref<48xi32, #tpu.memory_space<smem>>
    %36 = arith.index_cast %35 : i32 to index
    %c0_16 = arith.constant 0 : index
    %37 = vector.load %arg2[%36, %c0_16] : memref<128x128xf32, #tpu.memory_space<vmem>>, vector<1x128xf32>
    %c9 = arith.constant 9 : index
    %38 = memref.load %arg0[%c9] : memref<48xi32, #tpu.memory_space<smem>>
    %39 = arith.index_cast %38 : i32 to index
    %c0_17 = arith.constant 0 : index
    %40 = vector.load %arg2[%39, %c0_17] : memref<128x128xf32, #tpu.memory_space<vmem>>, vector<1x128xf32>
    %c10 = arith.constant 10 : index
    %41 = memref.load %arg0[%c10] : memref<48xi32, #tpu.memory_space<smem>>
    %42 = arith.index_cast %41 : i32 to index
    %c0_18 = arith.constant 0 : index
    %43 = vector.load %arg2[%42, %c0_18] : memref<128x128xf32, #tpu.memory_space<vmem>>, vector<1x128xf32>
    %c11 = arith.constant 11 : index
    %44 = memref.load %arg0[%c11] : memref<48xi32, #tpu.memory_space<smem>>
    %45 = arith.index_cast %44 : i32 to index
    %c0_19 = arith.constant 0 : index
    %46 = vector.load %arg2[%45, %c0_19] : memref<128x128xf32, #tpu.memory_space<vmem>>, vector<1x128xf32>
    %c12 = arith.constant 12 : index
    %47 = memref.load %arg0[%c12] : memref<48xi32, #tpu.memory_space<smem>>
    %48 = arith.index_cast %47 : i32 to index
    %c0_20 = arith.constant 0 : index
    %49 = vector.load %arg2[%48, %c0_20] : memref<128x128xf32, #tpu.memory_space<vmem>>, vector<1x128xf32>
    %c13 = arith.constant 13 : index
    %50 = memref.load %arg0[%c13] : memref<48xi32, #tpu.memory_space<smem>>
    %51 = arith.index_cast %50 : i32 to index
    %c0_21 = arith.constant 0 : index
    %52 = vector.load %arg2[%51, %c0_21] : memref<128x128xf32, #tpu.memory_space<vmem>>, vector<1x128xf32>
    %c14 = arith.constant 14 : index
    %53 = memref.load %arg0[%c14] : memref<48xi32, #tpu.memory_space<smem>>
    %54 = arith.index_cast %53 : i32 to index
    %c0_22 = arith.constant 0 : index
    %55 = vector.load %arg2[%54, %c0_22] : memref<128x128xf32, #tpu.memory_space<vmem>>, vector<1x128xf32>
    %c15 = arith.constant 15 : index
    %56 = memref.load %arg0[%c15] : memref<48xi32, #tpu.memory_space<smem>>
    %57 = arith.index_cast %56 : i32 to index
    %c0_23 = arith.constant 0 : index
    %58 = vector.load %arg2[%57, %c0_23] : memref<128x128xf32, #tpu.memory_space<vmem>>, vector<1x128xf32>
    %59 = tpu.concatenate %37, %40, %43, %46, %49, %52, %55, %58 in 0 : vector<1x128xf32>, vector<1x128xf32>, vector<1x128xf32>, vector<1x128xf32>, vector<1x128xf32>, vector<1x128xf32>, vector<1x128xf32>, vector<1x128xf32> -> vector<8x128xf32>
    %60 = vector.broadcast %1 : vector<1x128xf32> to vector<8x128xf32>
    %61 = arith.addf %59, %60 : vector<8x128xf32>
    %cst_24 = arith.constant dense<0.000000e+00> : vector<8x256xf32>
    %62 = tpu.matmul %34, %0, %cst_24 {dimension_numbers = #tpu.dot_dimension_numbers<[1], [0], [0], [1], [0, 0, 1, 1], [], []>} : vector<8x128xf32>, vector<128x256xf32>, vector<8x256xf32> -> vector<8x256xf32>
    %63 = vector.extract_strided_slice %62 {offsets = [0, 128], sizes = [8, 128], strides = [1, 1]} : vector<8x256xf32> to vector<8x128xf32>
    %64 = vector.broadcast %2 : vector<1x128xf32> to vector<8x128xf32>
    %65 = arith.addf %63, %64 : vector<8x128xf32>
    %c0_25 = arith.constant 0 : index
    %c0_26 = arith.constant 0 : index
    %66 = vector.load %arg6[%c0_25, %c0_26] : memref<48x128xf32, #tpu.memory_space<vmem>>, vector<8x128xf32>
    tpu.vector_store %arg6[%c0_25, %c0_26], %65 {strides = array<i32>} : memref<48x128xf32, #tpu.memory_space<vmem>>, vector<8x128xf32>,
    %67 = vector.extract_strided_slice %62 {offsets = [0, 0], sizes = [8, 128], strides = [1, 1]} : vector<8x256xf32> to vector<8x128xf32>
    %68 = arith.addf %61, %67 : vector<8x128xf32>
    %69 = math.tanh %68 : vector<8x128xf32>
    %c16 = arith.constant 16 : index
    %70 = memref.load %arg0[%c16] : memref<48xi32, #tpu.memory_space<smem>>
    %71 = arith.index_cast %70 : i32 to index
    %c0_27 = arith.constant 0 : index
    %72 = vector.load %arg2[%71, %c0_27] : memref<128x128xf32, #tpu.memory_space<vmem>>, vector<1x128xf32>
    %c17 = arith.constant 17 : index
    %73 = memref.load %arg0[%c17] : memref<48xi32, #tpu.memory_space<smem>>
    %74 = arith.index_cast %73 : i32 to index
    %c0_28 = arith.constant 0 : index
    %75 = vector.load %arg2[%74, %c0_28] : memref<128x128xf32, #tpu.memory_space<vmem>>, vector<1x128xf32>
    %c18 = arith.constant 18 : index
    %76 = memref.load %arg0[%c18] : memref<48xi32, #tpu.memory_space<smem>>
    %77 = arith.index_cast %76 : i32 to index
    %c0_29 = arith.constant 0 : index
    %78 = vector.load %arg2[%77, %c0_29] : memref<128x128xf32, #tpu.memory_space<vmem>>, vector<1x128xf32>
    %c19 = arith.constant 19 : index
    %79 = memref.load %arg0[%c19] : memref<48xi32, #tpu.memory_space<smem>>
    %80 = arith.index_cast %79 : i32 to index
    %c0_30 = arith.constant 0 : index
    %81 = vector.load %arg2[%80, %c0_30] : memref<128x128xf32, #tpu.memory_space<vmem>>, vector<1x128xf32>
    %c20 = arith.constant 20 : index
    %82 = memref.load %arg0[%c20] : memref<48xi32, #tpu.memory_space<smem>>
    %83 = arith.index_cast %82 : i32 to index
    %c0_31 = arith.constant 0 : index
    %84 = vector.load %arg2[%83, %c0_31] : memref<128x128xf32, #tpu.memory_space<vmem>>, vector<1x128xf32>
    %c21 = arith.constant 21 : index
    %85 = memref.load %arg0[%c21] : memref<48xi32, #tpu.memory_space<smem>>
    %86 = arith.index_cast %85 : i32 to index
    %c0_32 = arith.constant 0 : index
    %87 = vector.load %arg2[%86, %c0_32] : memref<128x128xf32, #tpu.memory_space<vmem>>, vector<1x128xf32>
    %c22 = arith.constant 22 : index
    %88 = memref.load %arg0[%c22] : memref<48xi32, #tpu.memory_space<smem>>
    %89 = arith.index_cast %88 : i32 to index
    %c0_33 = arith.constant 0 : index
    %90 = vector.load %arg2[%89, %c0_33] : memref<128x128xf32, #tpu.memory_space<vmem>>, vector<1x128xf32>
    %c23 = arith.constant 23 : index
    %91 = memref.load %arg0[%c23] : memref<48xi32, #tpu.memory_space<smem>>
    %92 = arith.index_cast %91 : i32 to index
    %c0_34 = arith.constant 0 : index
    %93 = vector.load %arg2[%92, %c0_34] : memref<128x128xf32, #tpu.memory_space<vmem>>, vector<1x128xf32>
    %94 = tpu.concatenate %72, %75, %78, %81, %84, %87, %90, %93 in 0 : vector<1x128xf32>, vector<1x128xf32>, vector<1x128xf32>, vector<1x128xf32>, vector<1x128xf32>, vector<1x128xf32>, vector<1x128xf32>, vector<1x128xf32> -> vector<8x128xf32>
    %95 = vector.broadcast %1 : vector<1x128xf32> to vector<8x128xf32>
    %96 = arith.addf %94, %95 : vector<8x128xf32>
    %cst_35 = arith.constant dense<0.000000e+00> : vector<8x256xf32>
    %97 = tpu.matmul %69, %0, %cst_35 {dimension_numbers = #tpu.dot_dimension_numbers<[1], [0], [0], [1], [0, 0, 1, 1], [], []>} : vector<8x128xf32>, vector<128x256xf32>, vector<8x256xf32> -> vector<8x256xf32>
    %98 = vector.extract_strided_slice %97 {offsets = [0, 128], sizes = [8, 128], strides = [1, 1]} : vector<8x256xf32> to vector<8x128xf32>
    %99 = vector.broadcast %2 : vector<1x128xf32> to vector<8x128xf32>
    %100 = arith.addf %98, %99 : vector<8x128xf32>
    %c8_36 = arith.constant 8 : index
    %c0_37 = arith.constant 0 : index
    %101 = vector.load %arg6[%c8_36, %c0_37] : memref<48x128xf32, #tpu.memory_space<vmem>>, vector<8x128xf32>
    tpu.vector_store %arg6[%c8_36, %c0_37], %100 {strides = array<i32>} : memref<48x128xf32, #tpu.memory_space<vmem>>, vector<8x128xf32>,
    %102 = vector.extract_strided_slice %97 {offsets = [0, 0], sizes = [8, 128], strides = [1, 1]} : vector<8x256xf32> to vector<8x128xf32>
    %103 = arith.addf %96, %102 : vector<8x128xf32>
    %104 = math.tanh %103 : vector<8x128xf32>
    %c24 = arith.constant 24 : index
    %105 = memref.load %arg0[%c24] : memref<48xi32, #tpu.memory_space<smem>>
    %106 = arith.index_cast %105 : i32 to index
    %c0_38 = arith.constant 0 : index
    %107 = vector.load %arg2[%106, %c0_38] : memref<128x128xf32, #tpu.memory_space<vmem>>, vector<1x128xf32>
    %c25 = arith.constant 25 : index
    %108 = memref.load %arg0[%c25] : memref<48xi32, #tpu.memory_space<smem>>
    %109 = arith.index_cast %108 : i32 to index
    %c0_39 = arith.constant 0 : index
    %110 = vector.load %arg2[%109, %c0_39] : memref<128x128xf32, #tpu.memory_space<vmem>>, vector<1x128xf32>
    %c26 = arith.constant 26 : index
    %111 = memref.load %arg0[%c26] : memref<48xi32, #tpu.memory_space<smem>>
    %112 = arith.index_cast %111 : i32 to index
    %c0_40 = arith.constant 0 : index
    %113 = vector.load %arg2[%112, %c0_40] : memref<128x128xf32, #tpu.memory_space<vmem>>, vector<1x128xf32>
    %c27 = arith.constant 27 : index
    %114 = memref.load %arg0[%c27] : memref<48xi32, #tpu.memory_space<smem>>
    %115 = arith.index_cast %114 : i32 to index
    %c0_41 = arith.constant 0 : index
    %116 = vector.load %arg2[%115, %c0_41] : memref<128x128xf32, #tpu.memory_space<vmem>>, vector<1x128xf32>
    %c28 = arith.constant 28 : index
    %117 = memref.load %arg0[%c28] : memref<48xi32, #tpu.memory_space<smem>>
    %118 = arith.index_cast %117 : i32 to index
    %c0_42 = arith.constant 0 : index
    %119 = vector.load %arg2[%118, %c0_42] : memref<128x128xf32, #tpu.memory_space<vmem>>, vector<1x128xf32>
    %c29 = arith.constant 29 : index
    %120 = memref.load %arg0[%c29] : memref<48xi32, #tpu.memory_space<smem>>
    %121 = arith.index_cast %120 : i32 to index
    %c0_43 = arith.constant 0 : index
    %122 = vector.load %arg2[%121, %c0_43] : memref<128x128xf32, #tpu.memory_space<vmem>>, vector<1x128xf32>
    %c30 = arith.constant 30 : index
    %123 = memref.load %arg0[%c30] : memref<48xi32, #tpu.memory_space<smem>>
    %124 = arith.index_cast %123 : i32 to index
    %c0_44 = arith.constant 0 : index
    %125 = vector.load %arg2[%124, %c0_44] : memref<128x128xf32, #tpu.memory_space<vmem>>, vector<1x128xf32>
    %c31 = arith.constant 31 : index
    %126 = memref.load %arg0[%c31] : memref<48xi32, #tpu.memory_space<smem>>
    %127 = arith.index_cast %126 : i32 to index
    %c0_45 = arith.constant 0 : index
    %128 = vector.load %arg2[%127, %c0_45] : memref<128x128xf32, #tpu.memory_space<vmem>>, vector<1x128xf32>
    %129 = tpu.concatenate %107, %110, %113, %116, %119, %122, %125, %128 in 0 : vector<1x128xf32>, vector<1x128xf32>, vector<1x128xf32>, vector<1x128xf32>, vector<1x128xf32>, vector<1x128xf32>, vector<1x128xf32>, vector<1x128xf32> -> vector<8x128xf32>
    %130 = vector.broadcast %1 : vector<1x128xf32> to vector<8x128xf32>
    %131 = arith.addf %129, %130 : vector<8x128xf32>
    %cst_46 = arith.constant dense<0.000000e+00> : vector<8x256xf32>
    %132 = tpu.matmul %104, %0, %cst_46 {dimension_numbers = #tpu.dot_dimension_numbers<[1], [0], [0], [1], [0, 0, 1, 1], [], []>} : vector<8x128xf32>, vector<128x256xf32>, vector<8x256xf32> -> vector<8x256xf32>
    %133 = vector.extract_strided_slice %132 {offsets = [0, 128], sizes = [8, 128], strides = [1, 1]} : vector<8x256xf32> to vector<8x128xf32>
    %134 = vector.broadcast %2 : vector<1x128xf32> to vector<8x128xf32>
    %135 = arith.addf %133, %134 : vector<8x128xf32>
    %c16_47 = arith.constant 16 : index
    %c0_48 = arith.constant 0 : index
    %136 = vector.load %arg6[%c16_47, %c0_48] : memref<48x128xf32, #tpu.memory_space<vmem>>, vector<8x128xf32>
    tpu.vector_store %arg6[%c16_47, %c0_48], %135 {strides = array<i32>} : memref<48x128xf32, #tpu.memory_space<vmem>>, vector<8x128xf32>,
    %137 = vector.extract_strided_slice %132 {offsets = [0, 0], sizes = [8, 128], strides = [1, 1]} : vector<8x256xf32> to vector<8x128xf32>
    %138 = arith.addf %131, %137 : vector<8x128xf32>
    %139 = math.tanh %138 : vector<8x128xf32>
    %c32 = arith.constant 32 : index
    %140 = memref.load %arg0[%c32] : memref<48xi32, #tpu.memory_space<smem>>
    %141 = arith.index_cast %140 : i32 to index
    %c0_49 = arith.constant 0 : index
    %142 = vector.load %arg2[%141, %c0_49] : memref<128x128xf32, #tpu.memory_space<vmem>>, vector<1x128xf32>
    %c33 = arith.constant 33 : index
    %143 = memref.load %arg0[%c33] : memref<48xi32, #tpu.memory_space<smem>>
    %144 = arith.index_cast %143 : i32 to index
    %c0_50 = arith.constant 0 : index
    %145 = vector.load %arg2[%144, %c0_50] : memref<128x128xf32, #tpu.memory_space<vmem>>, vector<1x128xf32>
    %c34 = arith.constant 34 : index
    %146 = memref.load %arg0[%c34] : memref<48xi32, #tpu.memory_space<smem>>
    %147 = arith.index_cast %146 : i32 to index
    %c0_51 = arith.constant 0 : index
    %148 = vector.load %arg2[%147, %c0_51] : memref<128x128xf32, #tpu.memory_space<vmem>>, vector<1x128xf32>
    %c35 = arith.constant 35 : index
    %149 = memref.load %arg0[%c35] : memref<48xi32, #tpu.memory_space<smem>>
    %150 = arith.index_cast %149 : i32 to index
    %c0_52 = arith.constant 0 : index
    %151 = vector.load %arg2[%150, %c0_52] : memref<128x128xf32, #tpu.memory_space<vmem>>, vector<1x128xf32>
    %c36 = arith.constant 36 : index
    %152 = memref.load %arg0[%c36] : memref<48xi32, #tpu.memory_space<smem>>
    %153 = arith.index_cast %152 : i32 to index
    %c0_53 = arith.constant 0 : index
    %154 = vector.load %arg2[%153, %c0_53] : memref<128x128xf32, #tpu.memory_space<vmem>>, vector<1x128xf32>
    %c37 = arith.constant 37 : index
    %155 = memref.load %arg0[%c37] : memref<48xi32, #tpu.memory_space<smem>>
    %156 = arith.index_cast %155 : i32 to index
    %c0_54 = arith.constant 0 : index
    %157 = vector.load %arg2[%156, %c0_54] : memref<128x128xf32, #tpu.memory_space<vmem>>, vector<1x128xf32>
    %c38 = arith.constant 38 : index
    %158 = memref.load %arg0[%c38] : memref<48xi32, #tpu.memory_space<smem>>
    %159 = arith.index_cast %158 : i32 to index
    %c0_55 = arith.constant 0 : index
    %160 = vector.load %arg2[%159, %c0_55] : memref<128x128xf32, #tpu.memory_space<vmem>>, vector<1x128xf32>
    %c39 = arith.constant 39 : index
    %161 = memref.load %arg0[%c39] : memref<48xi32, #tpu.memory_space<smem>>
    %162 = arith.index_cast %161 : i32 to index
    %c0_56 = arith.constant 0 : index
    %163 = vector.load %arg2[%162, %c0_56] : memref<128x128xf32, #tpu.memory_space<vmem>>, vector<1x128xf32>
    %164 = tpu.concatenate %142, %145, %148, %151, %154, %157, %160, %163 in 0 : vector<1x128xf32>, vector<1x128xf32>, vector<1x128xf32>, vector<1x128xf32>, vector<1x128xf32>, vector<1x128xf32>, vector<1x128xf32>, vector<1x128xf32> -> vector<8x128xf32>
    %165 = vector.broadcast %1 : vector<1x128xf32> to vector<8x128xf32>
    %166 = arith.addf %164, %165 : vector<8x128xf32>
    %cst_57 = arith.constant dense<0.000000e+00> : vector<8x256xf32>
    %167 = tpu.matmul %139, %0, %cst_57 {dimension_numbers = #tpu.dot_dimension_numbers<[1], [0], [0], [1], [0, 0, 1, 1], [], []>} : vector<8x128xf32>, vector<128x256xf32>, vector<8x256xf32> -> vector<8x256xf32>
    %168 = vector.extract_strided_slice %167 {offsets = [0, 128], sizes = [8, 128], strides = [1, 1]} : vector<8x256xf32> to vector<8x128xf32>
    %169 = vector.broadcast %2 : vector<1x128xf32> to vector<8x128xf32>
    %170 = arith.addf %168, %169 : vector<8x128xf32>
    %c24_58 = arith.constant 24 : index
    %c0_59 = arith.constant 0 : index
    %171 = vector.load %arg6[%c24_58, %c0_59] : memref<48x128xf32, #tpu.memory_space<vmem>>, vector<8x128xf32>
    tpu.vector_store %arg6[%c24_58, %c0_59], %170 {strides = array<i32>} : memref<48x128xf32, #tpu.memory_space<vmem>>, vector<8x128xf32>,
    %172 = vector.extract_strided_slice %167 {offsets = [0, 0], sizes = [8, 128], strides = [1, 1]} : vector<8x256xf32> to vector<8x128xf32>
    %173 = arith.addf %166, %172 : vector<8x128xf32>
    %174 = math.tanh %173 : vector<8x128xf32>
    %c40 = arith.constant 40 : index
    %175 = memref.load %arg0[%c40] : memref<48xi32, #tpu.memory_space<smem>>
    %176 = arith.index_cast %175 : i32 to index
    %c0_60 = arith.constant 0 : index
    %177 = vector.load %arg2[%176, %c0_60] : memref<128x128xf32, #tpu.memory_space<vmem>>, vector<1x128xf32>
    %c41 = arith.constant 41 : index
    %178 = memref.load %arg0[%c41] : memref<48xi32, #tpu.memory_space<smem>>
    %179 = arith.index_cast %178 : i32 to index
    %c0_61 = arith.constant 0 : index
    %180 = vector.load %arg2[%179, %c0_61] : memref<128x128xf32, #tpu.memory_space<vmem>>, vector<1x128xf32>
    %c42 = arith.constant 42 : index
    %181 = memref.load %arg0[%c42] : memref<48xi32, #tpu.memory_space<smem>>
    %182 = arith.index_cast %181 : i32 to index
    %c0_62 = arith.constant 0 : index
    %183 = vector.load %arg2[%182, %c0_62] : memref<128x128xf32, #tpu.memory_space<vmem>>, vector<1x128xf32>
    %c43 = arith.constant 43 : index
    %184 = memref.load %arg0[%c43] : memref<48xi32, #tpu.memory_space<smem>>
    %185 = arith.index_cast %184 : i32 to index
    %c0_63 = arith.constant 0 : index
    %186 = vector.load %arg2[%185, %c0_63] : memref<128x128xf32, #tpu.memory_space<vmem>>, vector<1x128xf32>
    %c44 = arith.constant 44 : index
    %187 = memref.load %arg0[%c44] : memref<48xi32, #tpu.memory_space<smem>>
    %188 = arith.index_cast %187 : i32 to index
    %c0_64 = arith.constant 0 : index
    %189 = vector.load %arg2[%188, %c0_64] : memref<128x128xf32, #tpu.memory_space<vmem>>, vector<1x128xf32>
    %c45 = arith.constant 45 : index
    %190 = memref.load %arg0[%c45] : memref<48xi32, #tpu.memory_space<smem>>
    %191 = arith.index_cast %190 : i32 to index
    %c0_65 = arith.constant 0 : index
    %192 = vector.load %arg2[%191, %c0_65] : memref<128x128xf32, #tpu.memory_space<vmem>>, vector<1x128xf32>
    %c46 = arith.constant 46 : index
    %193 = memref.load %arg0[%c46] : memref<48xi32, #tpu.memory_space<smem>>
    %194 = arith.index_cast %193 : i32 to index
    %c0_66 = arith.constant 0 : index
    %195 = vector.load %arg2[%194, %c0_66] : memref<128x128xf32, #tpu.memory_space<vmem>>, vector<1x128xf32>
    %c47 = arith.constant 47 : index
    %196 = memref.load %arg0[%c47] : memref<48xi32, #tpu.memory_space<smem>>
    %197 = arith.index_cast %196 : i32 to index
    %c0_67 = arith.constant 0 : index
    %198 = vector.load %arg2[%197, %c0_67] : memref<128x128xf32, #tpu.memory_space<vmem>>, vector<1x128xf32>
    %199 = tpu.concatenate %177, %180, %183, %186, %189, %192, %195, %198 in 0 : vector<1x128xf32>, vector<1x128xf32>, vector<1x128xf32>, vector<1x128xf32>, vector<1x128xf32>, vector<1x128xf32>, vector<1x128xf32>, vector<1x128xf32> -> vector<8x128xf32>
    %200 = vector.broadcast %1 : vector<1x128xf32> to vector<8x128xf32>
    %201 = arith.addf %199, %200 : vector<8x128xf32>
    %cst_68 = arith.constant dense<0.000000e+00> : vector<8x256xf32>
    %202 = tpu.matmul %174, %0, %cst_68 {dimension_numbers = #tpu.dot_dimension_numbers<[1], [0], [0], [1], [0, 0, 1, 1], [], []>} : vector<8x128xf32>, vector<128x256xf32>, vector<8x256xf32> -> vector<8x256xf32>
    %203 = vector.extract_strided_slice %202 {offsets = [0, 128], sizes = [8, 128], strides = [1, 1]} : vector<8x256xf32> to vector<8x128xf32>
    %204 = vector.broadcast %2 : vector<1x128xf32> to vector<8x128xf32>
    %205 = arith.addf %203, %204 : vector<8x128xf32>
    %c32_69 = arith.constant 32 : index
    %c0_70 = arith.constant 0 : index
    %206 = vector.load %arg6[%c32_69, %c0_70] : memref<48x128xf32, #tpu.memory_space<vmem>>, vector<8x128xf32>
    tpu.vector_store %arg6[%c32_69, %c0_70], %205 {strides = array<i32>} : memref<48x128xf32, #tpu.memory_space<vmem>>, vector<8x128xf32>,
    %207 = vector.extract_strided_slice %202 {offsets = [0, 0], sizes = [8, 128], strides = [1, 1]} : vector<8x256xf32> to vector<8x128xf32>
    %208 = arith.addf %201, %207 : vector<8x128xf32>
    %209 = math.tanh %208 : vector<8x128xf32>
    %c0_71 = arith.constant 0 : index
    %c0_72 = arith.constant 0 : index
    %210 = vector.load %arg7[%c0_71, %c0_72] : memref<8x128xf32, #tpu.memory_space<vmem>>, vector<8x128xf32>
    tpu.vector_store %arg7[%c0_71, %c0_72], %209 {strides = array<i32>} : memref<8x128xf32, #tpu.memory_space<vmem>>, vector<8x128xf32>,
    %211 = vector.extract_strided_slice %0 {offsets = [0, 128], sizes = [128, 128], strides = [1, 1]} : vector<128x256xf32> to vector<128x128xf32>
    %cst_73 = arith.constant dense<0.000000e+00> : vector<8x128xf32>
    %212 = tpu.matmul %209, %211, %cst_73 {dimension_numbers = #tpu.dot_dimension_numbers<[1], [0], [0], [1], [0, 0, 1, 1], [], []>} : vector<8x128xf32>, vector<128x128xf32>, vector<8x128xf32> -> vector<8x128xf32>
    %213 = vector.broadcast %2 : vector<1x128xf32> to vector<8x128xf32>
    %214 = arith.addf %212, %213 : vector<8x128xf32>
    %c40_74 = arith.constant 40 : index
    %c0_75 = arith.constant 0 : index
    %215 = vector.load %arg6[%c40_74, %c0_75] : memref<48x128xf32, #tpu.memory_space<vmem>>, vector<8x128xf32>
    tpu.vector_store %arg6[%c40_74, %c0_75], %214 {strides = array<i32>} : memref<48x128xf32, #tpu.memory_space<vmem>>, vector<8x128xf32>,
    return
  }
}

</mosaic_0001>

<bundles_post_ra>
// kernel: rnn_model_forward.1
= control target key start
LH: loop header
LB: loop body
LE: loop exit
PB: predicated region body
PF: predicated region fallthrough
CT: control target
= control target key end

     0   :  { %13 = vsyncpa [#allocation5], 0  ;;  %s1810_s0 = inlined_call_operand.vmem [shape: s32[48], index: 0, kind: input, shape index: {}]   ;;  %s1811_s1 = inlined_call_operand.vmem [shape: f32[8,128], index: 1, kind: input, shape index: {}]   ;;  %s1812_s2 = inlined_call_operand.hbm [shape: f32[128,128], index: 2, kind: input, shape index: {}]   ;;  %s1813_s3 = inlined_call_operand.vmem [shape: f32[1,128], index: 3, kind: input, shape index: {}]   ;;  %s1814_s4 = inlined_call_operand.hbm [shape: f32[128,256], index: 4, kind: input, shape index: {}]   ;;  %s1815_s5 = inlined_call_operand.vmem [shape: f32[1,128], index: 5, kind: input, shape index: {}]   ;;  %s1816_s6 = inlined_call_operand.hbm [shape: f32[48,128], index: 6, kind: output, shape index: {0}]   ;;  %s1817_s7 = inlined_call_operand.hbm [shape: f32[8,128], index: 7, kind: output, shape index: {1}]  }
   0x1   :  { %14 = vsyncpa [#allocation3], 0 }
   0x2   :  { %15 = vsyncpa [#allocation8], 0 }
   0x3   :  { %16 = vsyncpa [#allocation4], 0 }
   0x4   :  { %17 = vsyncpa [#allocation11], 0  ;;  %s24_s26 = sshll.u32 %s1810_s0, 4  ;;  %s25_s26 = int_to_ptr.vmem [resolvable:$true] %s24_s26 }
   0x5   :  { %s1381_s27 = scalar_lea.vmem %s25_s26, 16  ;;  %p1386_p1 = scmp.lt.s32.totalorder %s25_s26, %s25_s26 }
   0x6   :  { %p1382_p0 = scmp.ne.s32.totalorder %s25_s26, %s1381_s27  ;;  %p1387_p2 = scmp.lt.s32.totalorder %s1381_s27, %s1381_s27 }
   0x8   :  { %p1388_p3 = por %p1387_p2, %p1386_p1 }
   0xa   :  { %p1389_p4 = pnand %p1388_p3, %p1382_p0 }
   0xc   :  { %1392 = shalt.err (!%p1389_p4)
}
   0xd   :  { %s1491_s28 = smov [#allocation2]   ;;  %s1492_s29 = smov [#allocation6]  }
   0xe   :  { %27 = dma.vmem_to_smem %s25_s26, 16, %s1491_s28, [#allocation5]  }
   0xf   :  { %s35_s30 = sshll.u32 %s1492_s29, 4  ;;  %s1393_s10 = scalar_lea.hbm %s1812_s2, 2048  ;;  %s36_s30 = int_to_ptr.vmem [resolvable:$true] %s35_s30 }
  0x10   :  { %p1394_p5 = scmp.ne.s32.totalorder %s1812_s2, %s1393_s10  ;;  %p1397_p6 = scmp.lt.u32.totalorder %s1393_s10, %s1812_s2 }
  0x12   :  { %p1399_p7 = pnand %p1397_p6, %p1394_p5 }
  0x14   :  { %1402 = shalt.err (!%p1399_p7)
}
  0x15   :  { %s1403_s14 = scalar_lea.vmem %s36_s30, 2048  ;;  %p1408_p9 = scmp.lt.s32.totalorder %s36_s30, %s36_s30 }
  0x16   :  { %p1404_p8 = scmp.ne.s32.totalorder %s36_s30, %s1403_s14  ;;  %p1409_p10 = scmp.lt.s32.totalorder %s1403_s14, %s1403_s14 }
  0x18   :  { %p1410_p11 = por %p1409_p10, %p1408_p9 }
  0x1a   :  { %p1411_p12 = pnand %p1410_p11, %p1404_p8 }
  0x1c   :  { %1414 = shalt.err (!%p1411_p12)
}
  0x1d   :  { %s1493_s15 = smov 128   ;;  %s1494_s16 = smov 8  }
  0x1e   :  { %41 = dma.hbm_to_vmem [thread:$0]  %s1812_s2, 2048, %s36_s30, [#allocation3], %s1493_s15, %s1493_s15, %s1494_s16  }
  0x1f   :  { %s1495_s19 = smov [#allocation7]   ;;  %s1415_s23 = scalar_lea.hbm %s1814_s4, 4096 }
  0x20   :  { %s49_s20 = sshll.u32 %s1495_s19, 4  ;;  %p1416_p13 = scmp.ne.s32.totalorder %s1814_s4, %s1415_s23  ;;  %s50_s20 = int_to_ptr.vmem [resolvable:$true] %s49_s20 }
  0x21   :  { %p1419_p0 = scmp.lt.u32.totalorder %s1415_s23, %s1814_s4 }
  0x23   :  { %p1421_p1 = pnand %p1419_p0, %p1416_p13 }
  0x25   :  { %1424 = shalt.err (!%p1421_p1)
}
  0x26   :  { %s1425_s28 = scalar_lea.vmem %s50_s20, 4096  ;;  %p1430_p3 = scmp.lt.s32.totalorder %s50_s20, %s50_s20 }
  0x27   :  { %p1426_p2 = scmp.ne.s32.totalorder %s50_s20, %s1425_s28  ;;  %p1431_p4 = scmp.lt.s32.totalorder %s1425_s28, %s1425_s28 }
  0x29   :  { %p1432_p5 = por %p1431_p4, %p1430_p3 }
  0x2b   :  { %p1433_p6 = pnand %p1432_p5, %p1426_p2 }
  0x2d   :  { %1436 = shalt.err (!%p1433_p6)
}
  0x2e   :  { %s1496_s2 = smov 256   ;;  %s1497_s29 = smov 16  }
  0x2f   :  { %55 = dma.hbm_to_vmem [thread:$0]  %s1814_s4, 4096, %s50_s20, [#allocation8], %s1496_s2, %s1496_s2, %s1497_s29  }
  0x30   :  { %1481 = dma.done.wait [#allocation5], 16  }
  0x31   :  { %1482 = vsyncadd [#allocation5], 4294967280 }
  0x32   :  { %1483 = dma.done.wait [#allocation3], 2048  }
  0x33   :  { %1484 = vsyncadd [#allocation3], 4294965248 }
  0x34   :  { %1485 = dma.done.wait [#allocation8], 4096  }
  0x35   :  { %1486 = vsyncadd [#allocation8], 4294963200 }
  0x36   :  { %67 = sfence }
  0x37   :  { %v69_v0 = vld [vmem:[#allocation7 + $0x8] sm:$0xff]  ;;  %v71_v1 = vld [vmem:[#allocation7 + $0x18] sm:$0xff]  ;;  %v68_v2 = vld [vmem:[#allocation7] sm:$0xff]  ;;  %v1498_v7 = vmov 0.0   ;;  %s1041_s10 = sld [smem:[#allocation2 + $0x2]]  ;;  %s103_s11 = sld [smem:[#allocation2]] }
  0x38   :  { %v1573_v3 = vpack.c.bf16 %v71_v1, %v69_v0  ;;  %v70_v4 = vld [vmem:[#allocation7 + $0x10] sm:$0xff]  ;;  %v73_v5 = vld [vmem:[#allocation7 + $0x28] sm:$0xff]  ;;  %v75_v6 = vld [vmem:[#allocation7 + $0x38] sm:$0xff]  ;;  %233 = vmatprep.mubr.f32.mxu0 %v1498_v7  ;;  %358 = vmatprep.mubr.f32.mxu1 %v1498_v7  ;;  %s1042_s12 = sld [smem:[#allocation2 + $0x3]]  ;;  %s1043_s0 = sld [smem:[#allocation2 + $0x4]]  ;;  %vm148_vm0 = vcmask 1040384  }
  0x39   :  { %v1577_v8 = vpack.c.bf16 %v70_v4, %v68_v2  ;;  %v1579_v9 = vpack.c.bf16 %v75_v6, %v73_v5  ;;  %v72_v10 = vld [vmem:[#allocation7 + $0x20] sm:$0xff]  ;;  %v74_v11 = vld [vmem:[#allocation7 + $0x30] sm:$0xff]  ;;  %v77_v12 = vld [vmem:[#allocation7 + $0x48] sm:$0xff]  ;;  %s1044_s14 = sld [smem:[#allocation2 + $0x5]]  ;;  %s1045_s19 = sld [smem:[#allocation2 + $0x6]]  ;;  %vm150_vm1 = vcmask 1041408  }
  0x3a   :  { %1142 = vmatprep.subr.bf16.mxu0 %v1573_v3  ;;  %v79_v13 = vld [vmem:[#allocation7 + $0x58] sm:$0xff]  ;;  %1174 = vmatprep.subr.bf16.mxu1 %v1573_v3  ;;  %v1584_v14 = vpack.c.bf16 %v74_v11, %v72_v10  ;;  %v76_v16 = vld [vmem:[#allocation7 + $0x40] sm:$0xff]  ;;  %v78_v17 = vld [vmem:[#allocation7 + $0x50] sm:$0xff]  ;;  %s1046_s21 = sld [smem:[#allocation2 + $0x7]]  ;;  %vm152_vm2 = vcmask 1042432   ;;  %vm154_vm3 = vcmask 1043456  }
  0x3b   :  { %1144 = vmatpush1.bf16.msra.mxu0 %v1577_v8  ;;  %1176 = vmatpush1.bf16.msra.mxu1 %v1577_v8  ;;  %v1588_v15 = vpack.c.bf16 %v79_v13, %v77_v12  ;;  %v81_v18 = vld [vmem:[#allocation7 + $0x68] sm:$0xff]  ;;  %v83_v19 = vld [vmem:[#allocation7 + $0x78] sm:$0xff]  ;;  %v1592_v20 = vpack.c.bf16 %v78_v17, %v76_v16  ;;  %v80_v22 = vld [vmem:[#allocation7 + $0x60] sm:$0xff]  ;;  %vm156_vm4 = vcmask 1044480   ;;  %vm158_vm5 = vcmask 1045504   ;;  %s1050_s28 = sld [smem:[#allocation2 + $0xa]] }
  0x3c   :  { %1146 = vmatprep.subr.bf16.mxu0 %v1579_v9  ;;  %1178 = vmatprep.subr.bf16.mxu1 %v1579_v9  ;;  %v1596_v21 = vpack.c.bf16 %v83_v19, %v81_v18  ;;  %v82_v23 = vld [vmem:[#allocation7 + $0x70] sm:$0xff]  ;;  %v85_v24 = vld [vmem:[#allocation7 + $0x88] sm:$0xff]  ;;  %v87_v25 = vld [vmem:[#allocation7 + $0x98] sm:$0xff]  ;;  %vm160_vm6 = vcmask 1046528   ;;  %s1048_s2 = sld [smem:[#allocation2 + $0x8]]  ;;  %s1051_s29 = sld [smem:[#allocation2 + $0xb]] }
  0x3d   :  { %v1600_v26 = vpack.c.bf16 %v82_v23, %v80_v22  ;;  %v1604_v27 = vpack.c.bf16 %v87_v25, %v85_v24  ;;  %v84_v28 = vld [vmem:[#allocation7 + $0x80] sm:$0xff]  ;;  %v86_v29 = vld [vmem:[#allocation7 + $0x90] sm:$0xff]  ;;  %v89_v30 = vld [vmem:[#allocation7 + $0xa8] sm:$0xff]  ;;  %s110_s17 = scalar_lea.vmem [#allocation6], %s1041_s10  ;;  %s104_s18 = scalar_lea.vmem [#allocation6], %s103_s11  ;;  %vm1500_vm7 = vmmov 0  }
  0x3e   :  { %v91_v31 = vld [vmem:[#allocation7 + $0xb8] sm:$0xff]  ;;  %v1608_v32 = vpack.c.bf16 %v86_v29, %v84_v28  ;;  %v88_v34 = vld [vmem:[#allocation7 + $0xa0] sm:$0xff]  ;;  %v90_v35 = vld [vmem:[#allocation7 + $0xb0] sm:$0xff]  ;;  %s113_s20 = scalar_lea.vmem [#allocation6], %s1042_s12  ;;  %s116_s22 = scalar_lea.vmem [#allocation6], %s1043_s0 }
  0x3f   :  { %1148 = vmatpush1.bf16.msra.mxu0 %v1584_v14  ;;  %1180 = vmatpush1.bf16.msra.mxu1 %v1584_v14  ;;  %v1612_v33 = vpack.c.bf16 %v91_v31, %v89_v30  ;;  %v93_v36 = vld [vmem:[#allocation7 + $0xc8] sm:$0xff]  ;;  %v95_v37 = vld [vmem:[#allocation7 + $0xd8] sm:$0xff]  ;;  %v1616_v38 = vpack.c.bf16 %v90_v35, %v88_v34  ;;  %v92_v40 = vld [vmem:[#allocation7 + $0xc0] sm:$0xff]  ;;  %s119_s23 = scalar_lea.vmem [#allocation6], %s1044_s14  ;;  %s122_s24 = scalar_lea.vmem [#allocation6], %s1045_s19 }
  0x40   :  { %1150 = vmatprep.subr.bf16.mxu0 %v1588_v15  ;;  %1182 = vmatprep.subr.bf16.mxu1 %v1588_v15  ;;  %v1620_v39 = vpack.c.bf16 %v95_v37, %v93_v36  ;;  %v94_v41 = vld [vmem:[#allocation7 + $0xd0] sm:$0xff]  ;;  %v97_v42 = vld [vmem:[#allocation7 + $0xe8] sm:$0xff]  ;;  %v99_v43 = vld [vmem:[#allocation7 + $0xf8] sm:$0xff]  ;;  %s125_s25 = scalar_lea.vmem [#allocation6], %s1046_s21  ;;  %s1052_s30 = sld [smem:[#allocation2 + $0xc]] }
  0x41   :  { %v1624_v44 = vpack.c.bf16 %v94_v41, %v92_v40  ;;  %v1628_v45 = vpack.c.bf16 %v99_v43, %v97_v42  ;;  %v96_v46 = vld [vmem:[#allocation7 + $0xe0] sm:$0xff]  ;;  %v98_v47 = vld [vmem:[#allocation7 + $0xf0] sm:$0xff]  ;;  %s1053_s4 = sld [smem:[#allocation2 + $0xd]]  ;;  %s248_s9 = scalar_lea.vmem [#allocation6], %s1050_s28 }
  0x42   :  { %v1632_v48 = vpack.c.bf16 %v98_v47, %v96_v46  ;;  %v102_v49 = vld [vmem:[%s1811_s1] sm:$0xff]  ;;  %s1040_s1 = sld [smem:[#allocation2 + $0x1]]  ;;  %s1054_s10 = sld [smem:[#allocation2 + $0xe]] }
  0x43   :  { %1152 = vmatpush1.bf16.msra.mxu0 %v1592_v20  ;;  %1184 = vmatpush1.bf16.msra.mxu1 %v1592_v20  ;;  %v111_v51 = vld [vmem:[%s110_s17] sm:$0x1]  ;;  %s251_s11 = scalar_lea.vmem [#allocation6], %s1051_s29  ;;  %s1055_s12 = sld [smem:[#allocation2 + $0xf]] }
  0x44   :  { %1154 = vmatprep.subr.bf16.mxu0 %v1596_v21  ;;  %1186 = vmatprep.subr.bf16.mxu1 %v1596_v21  ;;  %v105_v53 = vld [vmem:[%s104_s18] sm:$0x1]  ;;  %v131_v55 = vrot.slane %v111_v51, 6  ;;  %s1057_s21 = sld [smem:[#allocation2 + $0x10]]  ;;  %s1071_s18 = sld [smem:[#allocation2 + $0x1e]] }
  0x45   :  { %v114_v54 = vld [vmem:[%s113_s20] sm:$0x1]  ;;  %s1059_s20 = sld [smem:[#allocation2 + $0x12]] }
  0x46   :  { %v117_v57 = vld [vmem:[%s116_s22] sm:$0x1]  ;;  %v134_v58 = vrot.slane %v114_v54, 5  ;;  %s254_s0 = scalar_lea.vmem [#allocation6], %s1052_s30  ;;  %s1060_s22 = sld [smem:[#allocation2 + $0x13]] }
  0x47   :  { %1156 = vmatpush1.bf16.msra.mxu0 %v1600_v26  ;;  %1188 = vmatpush1.bf16.msra.mxu1 %v1600_v26  ;;  %v120_v60 = vld [vmem:[%s119_s23] sm:$0x1]  ;;  %v137_v61 = vrot.slane %v117_v57, 4  ;;  %s1061_s23 = sld [smem:[#allocation2 + $0x14]] }
  0x48   :  { %1158 = vmatprep.subr.bf16.mxu0 %v1604_v27  ;;  %1190 = vmatprep.subr.bf16.mxu1 %v1604_v27  ;;  %s107_s13 = scalar_lea.vmem [#allocation6], %s1040_s1  ;;  %v123_v63 = vld [vmem:[%s122_s24] sm:$0x1]  ;;  %v140_v0 = vrot.slane %v120_v60, 3  ;;  %s242_s1 = scalar_lea.vmem [#allocation6], %s1048_s2 }
  0x49   :  { %v108_v50 = vld [vmem:[%s107_s13] sm:$0x1]  ;;  %v143_v4 = vrot.slane %v123_v63, 2  ;;  %s257_s13 = scalar_lea.vmem [#allocation6], %s1053_s4  ;;  %s260_s14 = scalar_lea.vmem [#allocation6], %s1054_s10 }
  0x4a   :  { %v128_v52 = vrot.slane %v108_v50, 7  ;;  %v126_v2 = vld [vmem:[%s125_s25] sm:$0x1]  ;;  %s263_s17 = scalar_lea.vmem [#allocation6], %s1055_s12  ;;  %s1062_s25 = sld [smem:[#allocation2 + $0x15]] }
  0x4b   :  { %1160 = vmatpush1.bf16.msra.mxu0 %v1608_v32  ;;  %1192 = vmatpush1.bf16.msra.mxu1 %v1608_v32  ;;  %v146_v6 = vrot.slane %v126_v2, 1  ;;  %v1670_v11 = vld [vmem:[%s1813_s3] ss:$0 sm:$0xff]  ;;  %s1049_s3 = sld [smem:[#allocation2 + $0x9]]  ;;  %s382_s26 = scalar_lea.vmem [#allocation6], %s1059_s20 }
  0x4c   :  { %1162 = vmatprep.subr.bf16.mxu0 %v1612_v33  ;;  %1194 = vmatprep.subr.bf16.mxu1 %v1612_v33  ;;  %v149_v56 = vsel %vm148_vm0, %v105_v53, %v128_v52  ;;  %v249_v23 = vld [vmem:[%s248_s9] sm:$0x1]  ;;  %s376_s27 = scalar_lea.vmem [#allocation6], %s1057_s21  ;;  %s385_s28 = scalar_lea.vmem [#allocation6], %s1060_s22 }
  0x4d   :  { %v151_v59 = vsel %vm150_vm1, %v149_v56, %v131_v55  ;;  %v243_v25 = vld [vmem:[%s242_s1] sm:$0x1]  ;;  %v269_v29 = vrot.slane %v249_v23, 6  ;;  %s1064_s2 = sld [smem:[#allocation2 + $0x17]]  ;;  %s388_s29 = scalar_lea.vmem [#allocation6], %s1061_s23 }
  0x4e   :  { %v153_v62 = vsel %vm152_vm2, %v151_v59, %v134_v58  ;;  %v252_v28 = vld [vmem:[%s251_s11] sm:$0x1]  ;;  %s1066_s9 = sld [smem:[#allocation2 + $0x19]]  ;;  %s1067_s1 = sld [smem:[#allocation2 + $0x1a]] }
  0x4f   :  { %1164 = vmatpush1.bf16.msra.mxu0 %v1616_v38  ;;  %1196 = vmatpush1.bf16.msra.mxu1 %v1616_v38  ;;  %v155_v1 = vsel %vm154_vm3, %v153_v62, %v137_v61  ;;  %v255_v31 = vld [vmem:[%s254_s0] sm:$0x1]  ;;  %v272_v34 = vrot.slane %v252_v28, 5  ;;  %s1065_s10 = sld [smem:[#allocation2 + $0x18]]  ;;  %s1068_s11 = sld [smem:[#allocation2 + $0x1b]] }
  0x50   :  { %1166 = vmatprep.subr.bf16.mxu0 %v1620_v39  ;;  %1198 = vmatprep.subr.bf16.mxu1 %v1620_v39  ;;  %v157_v5 = vsel %vm156_vm4, %v155_v1, %v140_v0  ;;  %v258_v36 = vld [vmem:[%s257_s13] sm:$0x1]  ;;  %v275_v37 = vrot.slane %v255_v31, 4  ;;  %s391_s30 = scalar_lea.vmem [#allocation6], %s1062_s25  ;;  %s1069_s12 = sld [smem:[#allocation2 + $0x1c]] }
  0x51   :  { %v159_v10 = vsel %vm158_vm5, %v157_v5, %v143_v4  ;;  %s245_s8 = scalar_lea.vmem [#allocation6], %s1049_s3  ;;  %v261_v41 = vld [vmem:[%s260_s14] sm:$0x1]  ;;  %v278_v42 = vrot.slane %v258_v36, 3  ;;  %s1063_s3 = sld [smem:[#allocation2 + $0x16]] }
  0x52   :  { %v161_v12 = vsel %vm160_vm6, %v159_v10, %v146_v6  ;;  %v246_v22 = vld [vmem:[%s245_s8] sm:$0x1]  ;;  %v281_v47 = vrot.slane %v261_v41, 2  ;;  %s1070_s13 = sld [smem:[#allocation2 + $0x1d]]  ;;  %s522_s22 = scalar_lea.vmem [#allocation6], %s1071_s18 }
  0x53   :  { %1168 = vmatpush1.bf16.msra.mxu0 %v1624_v44  ;;  %1200 = vmatpush1.bf16.msra.mxu1 %v1624_v44  ;;  %v168_v13 = vadd.f32 %v1670_v11, %v161_v12  ;;  %v266_v24 = vrot.slane %v246_v22, 7  ;;  %v264_v46 = vld [vmem:[%s263_s17] sm:$0x1]  ;;  %s397_s4 = scalar_lea.vmem [#allocation6], %s1064_s2  ;;  %s1075_s25 = sld [smem:[#allocation2 + $0x22]] }
  0x54   :  { %1170 = vmatprep.subr.bf16.mxu0 %v1628_v45  ;;  %1202 = vmatprep.subr.bf16.mxu1 %v1628_v45  ;;  %v284_v50 = vrot.slane %v264_v46, 1  ;;  %v1702_v54 = vld [vmem:[%s1815_s5] ss:$0 sm:$0xff]  ;;  %s1058_s5 = sld [smem:[#allocation2 + $0x11]]  ;;  %s507_s0 = scalar_lea.vmem [#allocation6], %s1066_s9 }
  0x55   :  { %v286_v30 = vsel %vm148_vm0, %v243_v25, %v266_v24  ;;  %v383_v61 = vld [vmem:[%s382_s26] sm:$0x1]  ;;  %s510_s14 = scalar_lea.vmem [#allocation6], %s1067_s1  ;;  %s504_s17 = scalar_lea.vmem [#allocation6], %s1065_s10 }
  0x56   :  { %v287_v35 = vsel %vm150_vm1, %v286_v30, %v269_v29  ;;  %v377_v63 = vld [vmem:[%s376_s27] sm:$0x1]  ;;  %v403_v1 = vrot.slane %v383_v61, 6  ;;  %s513_s19 = scalar_lea.vmem [#allocation6], %s1068_s11  ;;  %s516_s20 = scalar_lea.vmem [#allocation6], %s1069_s12 }
  0x57   :  { %1172 = vmatpush1.bf16.msra.mxu0 %v1632_v48  ;;  %1204 = vmatpush1.bf16.msra.mxu1 %v1632_v48  ;;  %v288_v40 = vsel %vm152_vm2, %v287_v35, %v272_v34  ;;  %v386_v0 = vld [vmem:[%s385_s28] sm:$0x1]  ;;  %s394_s8 = scalar_lea.vmem [#allocation6], %s1063_s3  ;;  %s1073_s26 = sld [smem:[#allocation2 + $0x20]] }
  0x58   :  { %1206 = vmatprep.subr.bf16.mxu0 %v1573_v3  ;;  %1238 = vmatprep.subr.bf16.mxu1 %v1573_v3  ;;  %v289_v43 = vsel %vm154_vm3, %v288_v40, %v275_v37  ;;  %v389_v4 = vld [vmem:[%s388_s29] sm:$0x1]  ;;  %v406_v5 = vrot.slane %v386_v0, 5  ;;  %s519_s21 = scalar_lea.vmem [#allocation6], %s1070_s13  ;;  %s1076_s27 = sld [smem:[#allocation2 + $0x23]] }
  0x59   :  { %v392_v10 = vld [vmem:[%s391_s30] sm:$0x1]  ;;  %v409_v12 = vrot.slane %v389_v4, 4  ;;  %s1077_s3 = sld [smem:[#allocation2 + $0x24]]  ;;  %s1078_s2 = sld [smem:[#allocation2 + $0x25]] }
  0x5a   :  { %234 = vmatmul.mubr.f32.vlgmr.msra.gmra.mrb[0].mxu0 %v102_v49  ;;  %v290_v49 = vsel %vm156_vm4, %v289_v43, %v278_v42  ;;  %s379_s24 = scalar_lea.vmem [#allocation6], %s1058_s5  ;;  %s1072_s5 = sld [smem:[#allocation2 + $0x1f]]  ;;  %v520_v41 = vld [vmem:[%s519_s21] sm:$0x1] }
  0x5b   :  { %1208 = vmatpush1.bf16.msra.mxu0 %v1577_v8  ;;  %492 = vmatprep.mubr.f32.mxu0 %v1498_v7  ;;  %v291_v51 = vsel %vm158_vm5, %v290_v49, %v281_v47  ;;  %v380_v60 = vld [vmem:[%s379_s24] sm:$0x1]  ;;  %v540_v47 = vrot.slane %v520_v41, 3  ;;  %s1074_s24 = sld [smem:[#allocation2 + $0x21]]  ;;  %s638_s29 = scalar_lea.vmem [#allocation6], %s1075_s25 }
  0x5c   :  { %1210 = vmatprep.subr.bf16.mxu0 %v1579_v9  ;;  %v292_v52 = vsel %vm160_vm6, %v291_v51, %v284_v50  ;;  %v400_v62 = vrot.slane %v380_v60, 7  ;;  %v523_v46 = vld [vmem:[%s522_s22] sm:$0x1]  ;;  %s1080_s9 = sld [smem:[#allocation2 + $0x27]]  ;;  %s1083_s13 = sld [smem:[#allocation2 + $0x2a]] }
  0x5d   :  { %v293_v53 = vadd.f32 %v1670_v11, %v292_v52  ;;  %v543_v51 = vrot.slane %v523_v46, 2  ;;  %s632_s30 = scalar_lea.vmem [#allocation6], %s1073_s26  ;;  %s1085_s18 = sld [smem:[#allocation2 + $0x2c]] }
  0x5e   :  { %v420_v2 = vsel %vm148_vm0, %v377_v63, %v400_v62  ;;  %v1499_v63 = vmov 0.0|0.0   ;;  %s1087_s22 = sld [smem:[#allocation2 + $0x2e]] }
  0x5f   :  { %1212 = vmatpush1.bf16.msra.mxu0 %v1584_v14  ;;  %v421_v6 = vsel %vm150_vm1, %v420_v2, %v403_v1  ;;  %s644_s1 = scalar_lea.vmem [#allocation6], %s1077_s3  ;;  %s647_s10 = scalar_lea.vmem [#allocation6], %s1078_s2 }
  0x60   :  { %1214 = vmatprep.subr.bf16.mxu0 %v1588_v15  ;;  %s525_s23 = scalar_lea.vmem [#allocation6], %s1072_s5  ;;  %v648_v2 = vld [vmem:[%s647_s10] sm:$0x1]  ;;  %s1086_s5 = sld [smem:[#allocation2 + $0x2d]] }
  0x61   :  { %v526_v50 = vld [vmem:[%s525_s23] sm:$0x1]  ;;  %s635_s28 = scalar_lea.vmem [#allocation6], %s1074_s24  ;;  %s1088_s24 = sld [smem:[#allocation2 + $0x2f]] }
  0x62   :  { %s653_s12 = scalar_lea.vmem [#allocation6], %s1080_s9 }
  0x63   :  { %1216 = vmatpush1.bf16.msra.mxu0 %v1592_v20  ;;  %s772_s25 = scalar_lea.vmem [#allocation6], %s1085_s18 }
  0x64   :  { %1218 = vmatprep.subr.bf16.mxu0 %v1596_v21 }
  0x66   :  { %s775_s26 = scalar_lea.vmem [#allocation6], %s1086_s5 }
  0x67   :  { %1220 = vmatpush1.bf16.msra.mxu0 %v1600_v26  ;;  %s781_s3 = scalar_lea.vmem [#allocation6], %s1088_s24 }
  0x68   :  { %1222 = vmatprep.subr.bf16.mxu0 %v1604_v27 }
  0x6b   :  { %1224 = vmatpush1.bf16.msra.mxu0 %v1608_v32 }
  0x6c   :  { %1226 = vmatprep.subr.bf16.mxu0 %v1612_v33 }
  0x6f   :  { %1228 = vmatpush1.bf16.msra.mxu0 %v1616_v38 }
  0x70   :  { %1230 = vmatprep.subr.bf16.mxu0 %v1620_v39 }
  0x73   :  { %1232 = vmatpush1.bf16.msra.mxu0 %v1624_v44 }
  0x74   :  { %1234 = vmatprep.subr.bf16.mxu0 %v1628_v45 }
  0x77   :  { %1236 = vmatpush1.bf16.msra.mxu0 %v1632_v48 }
  0x78   :  { %1270 = vmatprep.subr.bf16.mxu0 %v1573_v3 }
 0x12d   :  { %v235_v16 = vpop.f32.mrb[0].mxu0 }
 0x12e   :  { %v239_v17 = vadd.f32 %v235_v16, %v168_v13  ;;  %v237_v18 = vpop.f32.mrb[1].mxu0  ;;  %v422_v13 = vsel %vm152_vm2, %v421_v6, %v406_v5  ;;  %v395_v16 = vld [vmem:[%s394_s8] sm:$0x1]  ;;  %s1079_s8 = sld [smem:[#allocation2 + $0x26]] }
 0x12f   :  { %v423_v18 = vsel %vm154_vm3, %v422_v13, %v409_v12  ;;  %v415_v22 = vrot.slane %v395_v16, 2  ;;  %v654_v13 = vld [vmem:[%s653_s12] sm:$0x1] }
 0x130   :  { %1369 = vtanh.f32 %v239_v17  ;;  %v412_v17 = vrot.slane %v392_v10, 3  ;;  %v668_v10 = vrot.slane %v648_v2, 3 }
 0x132   :  { %v424_v23 = vsel %vm156_vm4, %v423_v18, %v412_v17  ;;  %v674_v18 = vrot.slane %v654_v13, 1 }
 0x133   :  { %v425_v25 = vsel %vm158_vm5, %v424_v23, %v415_v22 }
 0x134   :  { %s650_s11 = scalar_lea.vmem [#allocation6], %s1079_s8 }
 0x135   :  { %v651_v6 = vld [vmem:[%s650_s11] sm:$0x1] }
 0x136   :  { %v671_v16 = vrot.slane %v651_v6, 2 }
 0x13a   :  { %v1370_v19 = vpop.eup %1369 }
 0x13b   :  { %359 = vmatmul.mubr.f32.vlgmr.msra.gmra.mrb[0].mxu1 %v1370_v19  ;;  %v398_v19 = vld [vmem:[%s397_s4] sm:$0x1]  ;;  %s641_s4 = scalar_lea.vmem [#allocation6], %s1076_s27  ;;  %s778_s27 = scalar_lea.vmem [#allocation6], %s1087_s22 }
 0x13c   :  { %1240 = vmatpush1.bf16.msra.mxu1 %v1577_v8  ;;  %620 = vmatprep.mubr.f32.mxu1 %v1498_v7  ;;  %v418_v24 = vrot.slane %v398_v19, 1 }
 0x13d   :  { %1242 = vmatprep.subr.bf16.mxu1 %v1579_v9 }
 0x13e   :  { %v426_v28 = vsel %vm160_vm6, %v425_v25, %v418_v24 }
 0x13f   :  { %v427_v29 = vadd.f32 %v1670_v11, %v426_v28 }
 0x140   :  { %1244 = vmatpush1.bf16.msra.mxu1 %v1584_v14 }
 0x141   :  { %1246 = vmatprep.subr.bf16.mxu1 %v1588_v15 }
 0x144   :  { %1248 = vmatpush1.bf16.msra.mxu1 %v1592_v20 }
 0x145   :  { %1250 = vmatprep.subr.bf16.mxu1 %v1596_v21 }
 0x148   :  { %1252 = vmatpush1.bf16.msra.mxu1 %v1600_v26 }
 0x149   :  { %1254 = vmatprep.subr.bf16.mxu1 %v1604_v27 }
 0x14c   :  { %1256 = vmatpush1.bf16.msra.mxu1 %v1608_v32 }
 0x14d   :  { %1258 = vmatprep.subr.bf16.mxu1 %v1612_v33 }
 0x150   :  { %1260 = vmatpush1.bf16.msra.mxu1 %v1616_v38 }
 0x151   :  { %1262 = vmatprep.subr.bf16.mxu1 %v1620_v39 }
 0x154   :  { %1264 = vmatpush1.bf16.msra.mxu1 %v1624_v44 }
 0x155   :  { %1266 = vmatprep.subr.bf16.mxu1 %v1628_v45 }
 0x158   :  { %1268 = vmatpush1.bf16.msra.mxu1 %v1632_v48 }
 0x159   :  { %1302 = vmatprep.subr.bf16.mxu1 %v1573_v3 }
 0x20e   :  { %v360_v55 = vpop.f32.mrb[0].mxu1 }
 0x20f   :  { %v373_v56 = vadd.f32 %v360_v55, %v293_v53  ;;  %v362_v57 = vpop.f32.mrb[1].mxu1  ;;  %v546_v53 = vrot.slane %v526_v50, 1 }
 0x210   :  { %v371_v58 = vadd.f32 %v1702_v54, %v362_v57 }
 0x211   :  { %1371 = vtanh.f32 %v373_v56 }
 0x212   :  { %372 = vst [vmem:[#allocation9] sm:$0xff] %v371_v58 }
 0x21b   :  { %v1372_v59 = vpop.eup %1371 }
 0x21c   :  { %493 = vmatmul.mubr.f32.vlgmr.msra.gmra.mrb[2].mxu0 %v1372_v59 }
 0x21d   :  { %1272 = vmatpush1.bf16.msra.mxu0 %v1577_v8  ;;  %748 = vmatprep.mubr.f32.mxu0 %v1498_v7 }
 0x21e   :  { %1274 = vmatprep.subr.bf16.mxu0 %v1579_v9 }
 0x221   :  { %1276 = vmatpush1.bf16.msra.mxu0 %v1584_v14 }
 0x222   :  { %1278 = vmatprep.subr.bf16.mxu0 %v1588_v15 }
 0x225   :  { %1280 = vmatpush1.bf16.msra.mxu0 %v1592_v20 }
 0x226   :  { %1282 = vmatprep.subr.bf16.mxu0 %v1596_v21 }
 0x229   :  { %1284 = vmatpush1.bf16.msra.mxu0 %v1600_v26 }
 0x22a   :  { %1286 = vmatprep.subr.bf16.mxu0 %v1604_v27 }
 0x22d   :  { %1288 = vmatpush1.bf16.msra.mxu0 %v1608_v32 }
 0x22e   :  { %1290 = vmatprep.subr.bf16.mxu0 %v1612_v33 }
 0x231   :  { %1292 = vmatpush1.bf16.msra.mxu0 %v1616_v38 }
 0x232   :  { %1294 = vmatprep.subr.bf16.mxu0 %v1620_v39 }
 0x235   :  { %1296 = vmatpush1.bf16.msra.mxu0 %v1624_v44 }
 0x236   :  { %1298 = vmatprep.subr.bf16.mxu0 %v1628_v45 }
 0x239   :  { %1300 = vmatpush1.bf16.msra.mxu0 %v1632_v48 }
 0x23a   :  { %1333 = vmatprep.subr.bf16.mxu0 %v1499_v63 }
 0x2ef   :  { %v494_v30 = vpop.f32.mrb[2].mxu0 }
 0x2f0   :  { %v501_v31 = vadd.f32 %v494_v30, %v427_v29  ;;  %v496_v34 = vpop.f32.mrb[3].mxu0 }
 0x2f1   :  { %v499_v35 = vadd.f32 %v1702_v54, %v496_v34 }
 0x2f2   :  { %1373 = vtanh.f32 %v501_v31 }
 0x2f3   :  { %500 = vst [vmem:[#allocation9 + $0x8] sm:$0xff] %v499_v35 }
 0x2fc   :  { %v1374_v36 = vpop.eup %1373 }
 0x2fd   :  { %621 = vmatmul.mubr.f32.vlgmr.msra.gmra.mrb[2].mxu1 %v1374_v36 }
 0x2fe   :  { %1304 = vmatpush1.bf16.msra.mxu1 %v1577_v8  ;;  %876 = vmatprep.mubr.f32.mxu1 %v1498_v7  ;;  %v508_v8 = vld [vmem:[%s507_s0] sm:$0x1]  ;;  %s1082_s0 = sld [smem:[#allocation2 + $0x29]] }
 0x2ff   :  { %1306 = vmatprep.subr.bf16.mxu1 %v1579_v9 }
 0x302   :  { %1308 = vmatpush1.bf16.msra.mxu1 %v1584_v14  ;;  %v511_v14 = vld [vmem:[%s510_s14] sm:$0x1]  ;;  %s1081_s14 = sld [smem:[#allocation2 + $0x28]] }
 0x303   :  { %1310 = vmatprep.subr.bf16.mxu1 %v1588_v15 }
 0x306   :  { %1312 = vmatpush1.bf16.msra.mxu1 %v1592_v20  ;;  %v528_v20 = vrot.slane %v508_v8, 7 }
 0x307   :  { %1314 = vmatprep.subr.bf16.mxu1 %v1596_v21 }
 0x308   :  { %s760_s21 = scalar_lea.vmem [#allocation6], %s1081_s14 }
 0x309   :  { %v761_v36 = vld [vmem:[%s760_s21] sm:$0x1] }
 0x30a   :  { %1316 = vmatpush1.bf16.msra.mxu1 %v1600_v26  ;;  %v505_v26 = vld [vmem:[%s504_s17] sm:$0x1]  ;;  %s1084_s17 = sld [smem:[#allocation2 + $0x2b]] }
 0x30b   :  { %1318 = vmatprep.subr.bf16.mxu1 %v1604_v27 }
 0x30e   :  { %1320 = vmatpush1.bf16.msra.mxu1 %v1608_v32  ;;  %v514_v32 = vld [vmem:[%s513_s19] sm:$0x1]  ;;  %s763_s19 = scalar_lea.vmem [#allocation6], %s1082_s0 }
 0x30f   :  { %1322 = vmatprep.subr.bf16.mxu1 %v1612_v33  ;;  %v534_v37 = vrot.slane %v514_v32, 5  ;;  %v764_v31 = vld [vmem:[%s763_s19] sm:$0x1] }
 0x310   :  { %v784_v35 = vrot.slane %v764_v31, 7  ;;  %s769_s23 = scalar_lea.vmem [#allocation6], %s1084_s17 }
 0x311   :  { %v770_v8 = vld [vmem:[%s769_s23] sm:$0x1] }
 0x312   :  { %1324 = vmatpush1.bf16.msra.mxu1 %v1616_v38  ;;  %v531_v38 = vrot.slane %v511_v14, 6 }
 0x313   :  { %1326 = vmatprep.subr.bf16.mxu1 %v1620_v39 }
 0x316   :  { %1328 = vmatpush1.bf16.msra.mxu1 %v1624_v44  ;;  %v548_v44 = vsel %vm148_vm0, %v505_v26, %v528_v20  ;;  %v773_v20 = vld [vmem:[%s772_s25] sm:$0x1]  ;;  %v790_v26 = vrot.slane %v770_v8, 5 }
 0x317   :  { %1330 = vmatprep.subr.bf16.mxu1 %v1628_v45  ;;  %v549_v40 = vsel %vm150_vm1, %v548_v44, %v531_v38  ;;  %v776_v38 = vld [vmem:[%s775_s26] sm:$0x1]  ;;  %v793_v44 = vrot.slane %v773_v20, 4 }
 0x318   :  { %v550_v43 = vsel %vm152_vm2, %v549_v40, %v534_v37  ;;  %v779_v37 = vld [vmem:[%s778_s27] sm:$0x1]  ;;  %v796_v40 = vrot.slane %v776_v38, 3 }
 0x31a   :  { %1332 = vmatpush1.bf16.msra.mxu1 %v1632_v48  ;;  %v517_v48 = vld [vmem:[%s516_s20] sm:$0x1]  ;;  %s766_s20 = scalar_lea.vmem [#allocation6], %s1083_s13 }
 0x31b   :  { %v537_v42 = vrot.slane %v517_v48, 4  ;;  %v767_v34 = vld [vmem:[%s766_s20] sm:$0x1] }
 0x31c   :  { %v787_v14 = vrot.slane %v767_v34, 6 }
 0x31d   :  { %v551_v49 = vsel %vm154_vm3, %v550_v43, %v537_v42  ;;  %v782_v42 = vld [vmem:[%s781_s3] sm:$0x1]  ;;  %v799_v43 = vrot.slane %v779_v37, 2 }
 0x31e   :  { %v552_v52 = vsel %vm156_vm4, %v551_v49, %v540_v47  ;;  %v802_v47 = vrot.slane %v782_v42, 1 }
 0x31f   :  { %v553_v55 = vsel %vm158_vm5, %v552_v52, %v543_v51 }
 0x320   :  { %v554_v56 = vsel %vm160_vm6, %v553_v55, %v546_v53 }
 0x321   :  { %v555_v57 = vadd.f32 %v1670_v11, %v554_v56 }
 0x3d0   :  { %v622_v58 = vpop.f32.mrb[2].mxu1 }
 0x3d1   :  { %v629_v59 = vadd.f32 %v622_v58, %v555_v57  ;;  %v624_v60 = vpop.f32.mrb[3].mxu1 }
 0x3d2   :  { %v627_v61 = vadd.f32 %v1702_v54, %v624_v60 }
 0x3d3   :  { %1375 = vtanh.f32 %v629_v59 }
 0x3d4   :  { %628 = vst [vmem:[#allocation9 + $0x10] sm:$0xff] %v627_v61 }
 0x3dd   :  { %v1376_v62 = vpop.eup %1375 }
 0x3de   :  { %749 = vmatmul.mubr.f32.vlgmr.msra.gmra.mrb[4].mxu0 %v1376_v62 }
 0x3df   :  { %1335 = vmatpush3.bf16.msra.mxu0 %v1573_v3  ;;  %v636_v3 = vld [vmem:[%s635_s28] sm:$0x1]  ;;  %1138 = vmatprep.mubr.msk.f32.mxu0 %vm1500_vm7, %v1498_v7  ;;  %v804_v7 = vsel %vm148_vm0, %v761_v36, %v784_v35  ;;  %s1501_s28 = smov [#allocation10]  }
 0x3e0   :  { %1336 = vmatprep.subr.bf16.mxu0 %v1499_v63  ;;  %v805_v32 = vsel %vm150_vm1, %v804_v7, %v787_v14  ;;  %s977_s2 = sshll.u32 %s1501_s28, 4  ;;  %s978_s2 = int_to_ptr.vmem [resolvable:$true] %s977_s2 }
 0x3e1   :  { %v806_v48 = vsel %vm152_vm2, %v805_v32, %v790_v26  ;;  %p1442_p8 = scmp.lt.s32.totalorder %s978_s2, %s978_s2 }
 0x3e2   :  { %v807_v41 = vsel %vm154_vm3, %v806_v48, %v793_v44 }
 0x3e3   :  { %1338 = vmatpush3.bf16.msra.mxu0 %v1579_v9  ;;  %v639_v9 = vld [vmem:[%s638_s29] sm:$0x1]  ;;  %v808_v46 = vsel %vm156_vm4, %v807_v41, %v796_v40  ;;  %s1437_s29 = scalar_lea.vmem %s978_s2, 128 }
 0x3e4   :  { %1339 = vmatprep.subr.bf16.mxu0 %v1499_v63  ;;  %v809_v49 = vsel %vm158_vm5, %v808_v46, %v799_v43  ;;  %p1438_p7 = scmp.ne.s32.totalorder %s978_s2, %s1437_s29  ;;  %p1443_p9 = scmp.lt.s32.totalorder %s1437_s29, %s1437_s29 }
 0x3e5   :  { %v810_v50 = vsel %vm160_vm6, %v809_v49, %v802_v47 }
 0x3e6   :  { %v811_v51 = vadd.f32 %v1670_v11, %v810_v50  ;;  %p1444_p10 = por %p1443_p9, %p1442_p8 }
 0x3e7   :  { %1341 = vmatpush3.bf16.msra.mxu0 %v1588_v15  ;;  %v656_v15 = vrot.slane %v636_v3, 7 }
 0x3e8   :  { %1342 = vmatprep.subr.bf16.mxu0 %v1499_v63  ;;  %p1445_p11 = pnand %p1444_p10, %p1438_p7 }
 0x3eb   :  { %1344 = vmatpush3.bf16.msra.mxu0 %v1596_v21  ;;  %v633_v21 = vld [vmem:[%s632_s30] sm:$0x1] }
 0x3ec   :  { %1345 = vmatprep.subr.bf16.mxu0 %v1499_v63 }
 0x3ef   :  { %1347 = vmatpush3.bf16.msra.mxu0 %v1604_v27  ;;  %v642_v27 = vld [vmem:[%s641_s4] sm:$0x1] }
 0x3f0   :  { %1348 = vmatprep.subr.bf16.mxu0 %v1499_v63  ;;  %v662_v0 = vrot.slane %v642_v27, 5 }
 0x3f3   :  { %1350 = vmatpush3.bf16.msra.mxu0 %v1612_v33  ;;  %v659_v33 = vrot.slane %v639_v9, 6 }
 0x3f4   :  { %1351 = vmatprep.subr.bf16.mxu0 %v1499_v63 }
 0x3f7   :  { %1353 = vmatpush3.bf16.msra.mxu0 %v1620_v39  ;;  %v676_v39 = vsel %vm148_vm0, %v633_v21, %v656_v15 }
 0x3f8   :  { %1354 = vmatprep.subr.bf16.mxu0 %v1499_v63  ;;  %v677_v1 = vsel %vm150_vm1, %v676_v39, %v659_v33 }
 0x3f9   :  { %v678_v5 = vsel %vm152_vm2, %v677_v1, %v662_v0 }
 0x3fb   :  { %1356 = vmatpush3.bf16.msra.mxu0 %v1628_v45  ;;  %v645_v45 = vld [vmem:[%s644_s1] sm:$0x1] }
 0x3fc   :  { %v665_v4 = vrot.slane %v645_v45, 4 }
 0x3fe   :  { %v679_v12 = vsel %vm154_vm3, %v678_v5, %v665_v4 }
 0x3ff   :  { %v680_v17 = vsel %vm156_vm4, %v679_v12, %v668_v10 }
 0x400   :  { %v681_v19 = vsel %vm158_vm5, %v680_v17, %v671_v16 }
 0x401   :  { %v682_v22 = vsel %vm160_vm6, %v681_v19, %v674_v18 }
 0x402   :  { %v683_v23 = vadd.f32 %v1670_v11, %v682_v22 }
 0x4b1   :  { %v750_v24 = vpop.f32.mrb[4].mxu0 }
 0x4b2   :  { %v757_v25 = vadd.f32 %v750_v24, %v683_v23  ;;  %v752_v28 = vpop.f32.mrb[5].mxu0 }
 0x4b3   :  { %v755_v29 = vadd.f32 %v1702_v54, %v752_v28 }
 0x4b4   :  { %1377 = vtanh.f32 %v757_v25 }
 0x4b5   :  { %756 = vst [vmem:[#allocation9 + $0x18] sm:$0xff] %v755_v29 }
 0x4be   :  { %v1378_v30 = vpop.eup %1377 }
 0x4bf   :  { %877 = vmatmul.mubr.f32.vlgmr.msra.gmra.mrb[4].mxu1 %v1378_v30 }
 0x592   :  { %v878_v52 = vpop.f32.mrb[4].mxu1 }
 0x593   :  { %v885_v53 = vadd.f32 %v878_v52, %v811_v51  ;;  %v880_v55 = vpop.f32.mrb[5].mxu1 }
 0x594   :  { %v883_v56 = vadd.f32 %v1702_v54, %v880_v55 }
 0x595   :  { %1379 = vtanh.f32 %v885_v53 }
 0x596   :  { %884 = vst [vmem:[#allocation9 + $0x20] sm:$0xff] %v883_v56 }
 0x59f   :  { %v1380_v57 = vpop.eup %1379 }
 0x5a0   :  { %887 = vst [vmem:[#allocation10] sm:$0xff] %v1380_v57  ;;  %1139 = vmatmul.mubr.f32.vlgmr.msra.gmra.mrb[6].mxu0 %v1380_v57 }
 0x5a1   :  { %1448 = shalt.err (!%p1445_p11)
}
 0x5a2   :  { %s1449_s4 = scalar_lea.hbm %s1817_s7, 128 }
 0x5a3   :  { %p1450_p12 = scmp.ne.s32.totalorder %s1817_s7, %s1449_s4  ;;  %p1453_p13 = scmp.lt.u32.totalorder %s1449_s4, %s1817_s7 }
 0x5a5   :  { %p1455_p0 = pnand %p1453_p13, %p1450_p12 }
 0x5a7   :  { %1458 = shalt.err (!%p1455_p0)
}
 0x5a8   :  { %980 = dma.vmem_to_hbm [thread:$0]  %s978_s2, 128, %s1817_s7, [#allocation11]  }
 0x5a9   :  { %s1502_s13 = smov [#allocation9]  }
 0x5aa   :  { %s964_s14 = sshll.u32 %s1502_s13, 4  ;;  %s965_s14 = int_to_ptr.vmem [resolvable:$true] %s964_s14 }
 0x5ab   :  { %s1459_s17 = scalar_lea.vmem %s965_s14, 768  ;;  %p1464_p2 = scmp.lt.s32.totalorder %s965_s14, %s965_s14 }
 0x5ac   :  { %p1460_p1 = scmp.ne.s32.totalorder %s965_s14, %s1459_s17  ;;  %p1465_p3 = scmp.lt.s32.totalorder %s1459_s17, %s1459_s17 }
 0x5ae   :  { %p1466_p4 = por %p1465_p3, %p1464_p2 }
 0x5b0   :  { %p1467_p5 = pnand %p1466_p4, %p1460_p1 }
 0x673   :  { %v954_v11 = vpop.f32.mrb[6].mxu0 }
 0x674   :  { %v955_v58 = vadd.f32 %v1702_v54, %v954_v11  ;;  %v1140_v59 = vpop.f32.mrb[7].mxu0 }
 0x676   :  { %958 = vst [vmem:[#allocation9 + $0x28] sm:$0xff] %v955_v58 }
 0x677   :  { %1470 = shalt.err (!%p1467_p5)
}
 0x678   :  { %s1471_s5 = scalar_lea.hbm %s1816_s6, 768 }
 0x679   :  { %p1472_p6 = scmp.ne.s32.totalorder %s1816_s6, %s1471_s5  ;;  %p1475_p7 = scmp.lt.u32.totalorder %s1471_s5, %s1816_s6 }
 0x67b   :  { %p1477_p8 = pnand %p1475_p7, %p1472_p6 }
 0x67d   :  { %1480 = shalt.err (!%p1477_p8)
}
 0x67e   :  { %970 = dma.vmem_to_hbm [thread:$0]  %s965_s14, 768, %s1816_s6, [#allocation4], %s1493_s15, %s1493_s15, %s1494_s16  }
 0x67f   :  { %1487 = dma.done.wait [#allocation4], 768  }
 0x680   :  { %1488 = vsyncadd [#allocation4], 4294966528 }
 0x681   :  { %1489 = dma.done.wait [#allocation11], 128  }
 0x682   :  { %1490 = vsyncadd [#allocation11], 4294967168 }
 0x683   :  { %987 = vsyncpa [#allocation3], 1 }
 0x684   :  { %988 = vsyncpa [#allocation8], 1 }
 0x685   :  { %989 = vsyncpa [#allocation4], 1 }
 0x686   :  { %990 = vsyncpa [#allocation11], 1 }
 0x687   :  { %991 = vsyncpa [#allocation5], 1 }

</bundles_post_ra>
